<compile_context>
chip_gen: v6e
topology: v6e:2x2x1
jax: 0.10.0
libtpu: 0.0.40
codegen_flags: <defaults>
</compile_context>

<pallas_src>
import math

import jax
import jax.numpy as jnp
from jax.experimental import pallas as pl
from jax.experimental.pallas import tpu as pltpu

_LANES = 128
_SUBLANES = 8

# Per-block HBM byte budgets per input stream.  Region 0 moves two blocks per
# grid step (x_hat + target), so its per-input block is half the y/z block and
# every grid step moves ~the same number of bytes (~4 MiB / step).
_BYTES_PER_BLOCK_X = 2 * 1024 * 1024
_BYTES_PER_BLOCK_YZ = 4 * 1024 * 1024
_VMEM_LIMIT_BYTES = 40 * 1024 * 1024
_ACC_MAX_ROWS = 64  # widest per-region accumulator (good ILP, tiny VMEM)


# ----------------------------------------------------------------------------
# Wrapper-side layout helpers
# ----------------------------------------------------------------------------
def _carried_itemsize(x):
    """Itemsize after the carry policy: bf16 stays bf16, everything else f32."""
    return 2 if jnp.asarray(x).dtype == jnp.bfloat16 else 4


def _row_align_for(itemsize):
    """Native sublane tile in rows: 8 for 4-byte dtypes, 16 for 2-byte dtypes."""
    return _SUBLANES * (4 // itemsize)


def _to_lane_slab(x, pad_value, row_align):
    """Flatten to a lane-dense (rows, 128) slab.

    Keeps bf16 inputs as bf16 (upcast in-kernel); anything else is cast to f32.
    Pads with a reduction-neutral value only when the element count is not
    already a multiple of `row_align * 128`, so the common aligned case is a
    free reshape (no extra HBM traffic).
    """
    flat = jnp.asarray(x).reshape(-1)
    if flat.dtype != jnp.bfloat16:
        flat = flat.astype(jnp.float32)
    align = row_align * _LANES
    n = flat.shape[0]
    pad = (-n) % align
    if pad:
        flat = jnp.concatenate(
            [flat, jnp.full((pad,), pad_value, dtype=flat.dtype)])
    return flat.reshape(-1, _LANES)


def _block_rows(rows, itemsize, byte_budget):
    """Largest block (multiple of 64 rows) within the byte budget, <= rows."""
    budget = byte_budget // (_LANES * itemsize)
    budget = max(_ACC_MAX_ROWS, (budget // _ACC_MAX_ROWS) * _ACC_MAX_ROWS)
    return min(budget, rows)


def _acc_rows(block_rows):
    """Widest accumulator height in {64,32,16,8} that divides block_rows."""
    for r in (64, 32, 16, 8):
        if block_rows % r == 0:
            return r
    return block_rows


# ----------------------------------------------------------------------------
# Fused reduction kernel
# ----------------------------------------------------------------------------
def _rd_kernel_factory(reg_x, reg_y, reg_z):
    """reg_* are dicts of static ints: rows, br, b, hb, acc, start."""

    def _fold(v, acc_rows):
        # (block_rows, 128) f32 -> (acc_rows, 128): acc_rows/8 independent vreg
        # add chains (pure VPU work, overlaps the block DMA).
        r = v.shape[0]
        if r == acc_rows:
            return v
        return jnp.sum(v.reshape(r // acc_rows, acc_rows, _LANES), axis=0)

    def _accumulate(contrib, acc_ref, reg, c, i):
        rows, br, b = reg["rows"], reg["br"], reg["b"]
        hb, acc_rows, start = reg["hb"], reg["acc"], reg["start"]
        gi = c * hb + (i - start)  # this core's global block index in the region

        # Masking is only ever needed for the ragged last block (rows % br != 0)
        # or the core-1 overflow step when the block count is odd.
        ever_ragged = (rows % br != 0) or (b % 2 != 0)
        if not ever_ragged:
            acc_ref[...] += _fold(contrib, acc_rows)
            return

        needs_mask = (gi + 1) * br > rows

        @pl.when(jnp.logical_not(needs_mask))
        def _full():  # fast path: no iota / cmp / select
            acc_ref[...] += _fold(contrib, acc_rows)

        @pl.when(needs_mask)
        def _ragged():
            # valid may be <= 0 on core 1's overflow step -> whole block masked.
            valid = rows - gi * br
            row_ids = jax.lax.broadcasted_iota(jnp.int32, contrib.shape, 0)
            masked = jnp.where(row_ids < valid, contrib, 0.0)  # select: NaN-safe
            acc_ref[...] += _fold(masked, acc_rows)

    n_steps = reg_x["hb"] + reg_y["hb"] + reg_z["hb"]

    def kernel(xh_ref, tg_ref, y_ref, z_ref, sse_out, ylog_out, zlog_out):
        c = pl.program_id(0)   # core / half index ("parallel")
        i = pl.program_id(1)   # region step ("arbitrary")

        @pl.when(i == 0)
        def _init():
            sse_out[...] = jnp.zeros_like(sse_out)
            ylog_out[...] = jnp.zeros_like(ylog_out)
            zlog_out[...] = jnp.zeros_like(zlog_out)

        # ---- region 0: sum((x_hat - target)^2) ------------------------------
        @pl.when(i < reg_x["hb"])
        def _sse_step():
            d = xh_ref[...].astype(jnp.float32) - tg_ref[...].astype(jnp.float32)
            _accumulate(d * d, sse_out, reg_x, c, i)

        # ---- region 1: sum(log(y)) ------------------------------------------
        @pl.when(jnp.logical_and(i >= reg_y["start"],
                                 i < reg_y["start"] + reg_y["hb"]))
        def _ylog_step():
            _accumulate(jnp.log(y_ref[...].astype(jnp.float32)),
                        ylog_out, reg_y, c, i)

        # ---- region 2: sum(log(z)) ------------------------------------------
        @pl.when(i >= reg_z["start"])
        def _zlog_step():
            _accumulate(jnp.log(z_ref[...].astype(jnp.float32)),
                        zlog_out, reg_z, c, i)

    return kernel, n_steps


def _fused_rd_reductions(x_hat, target, y_lik, z_lik):
    """Returns (sum((x_hat-target)^2), sum(log y), sum(log z)) from one launch."""
    x_hat, target = jnp.asarray(x_hat), jnp.asarray(target)
    y_lik, z_lik = jnp.asarray(y_lik), jnp.asarray(z_lik)

    n_x, n_y, n_z = int(x_hat.size), int(y_lik.size), int(z_lik.size)

    # Guard degenerate empty inputs with one reduction-neutral tile.
    if n_x == 0:
        x_hat = jnp.zeros((_SUBLANES * _LANES,), jnp.float32)
        target = jnp.zeros((_SUBLANES * _LANES,), jnp.float32)
    if n_y == 0:
        y_lik = jnp.ones((_SUBLANES * _LANES,), jnp.float32)
    if n_z == 0:
        z_lik = jnp.ones((_SUBLANES * _LANES,), jnp.float32)

    # x_hat and target share one BlockSpec, so pad both to a COMMON row
    # alignment -> identical slab row counts even with mixed dtypes.
    is_x, is_t = _carried_itemsize(x_hat), _carried_itemsize(target)
    xt_align = max(_row_align_for(is_x), _row_align_for(is_t))
    xh = _to_lane_slab(x_hat, 0.0, xt_align)
    tg = _to_lane_slab(target, 0.0, xt_align)
    yl = _to_lane_slab(y_lik, 1.0, _row_align_for(_carried_itemsize(y_lik)))
    zl = _to_lane_slab(z_lik, 1.0, _row_align_for(_carried_itemsize(z_lik)))
    assert xh.shape[0] == tg.shape[0]

    rows_x, rows_y, rows_z = xh.shape[0], yl.shape[0], zl.shape[0]

    # Byte-budget, dtype-aware block sizing (region 0 gets half the budget per
    # input since it moves two blocks per step).
    br_x = _block_rows(rows_x, max(is_x, is_t), _BYTES_PER_BLOCK_X)
    br_y = _block_rows(rows_y, yl.dtype.itemsize, _BYTES_PER_BLOCK_YZ)
    br_z = _block_rows(rows_z, zl.dtype.itemsize, _BYTES_PER_BLOCK_YZ)

    bx, by, bz = pl.cdiv(rows_x, br_x), pl.cdiv(rows_y, br_y), pl.cdiv(rows_z, br_z)
    hbx, hby, hbz = pl.cdiv(bx, 2), pl.cdiv(by, 2), pl.cdiv(bz, 2)
    acc_x, acc_y, acc_z = _acc_rows(br_x), _acc_rows(br_y), _acc_rows(br_z)

    reg_x = dict(rows=rows_x, br=br_x, b=bx, hb=hbx, acc=acc_x, start=0)
    reg_y = dict(rows=rows_y, br=br_y, b=by, hb=hby, acc=acc_y, start=hbx)
    reg_z = dict(rows=rows_z, br=br_z, b=bz, hb=hbz, acc=acc_z, start=hbx + hby)

    kernel, n_steps = _rd_kernel_factory(reg_x, reg_y, reg_z)

    # Clamped / frozen index maps: outside its region an input's block index is
    # frozen, so Pallas does not re-issue its DMA.  Core c handles blocks
    # [c*hb, (c+1)*hb) of each region (clamped for the odd-count overflow step,
    # whose contribution is fully masked in-kernel).
    def xmap(c, i):
        return (jnp.minimum(c * hbx + jnp.minimum(i, hbx - 1), bx - 1), 0)

    def ymap(c, i):
        return (jnp.minimum(c * hby + jnp.clip(i - hbx, 0, hby - 1), by - 1), 0)

    def zmap(c, i):
        return (jnp.minimum(c * hbz + jnp.clip(i - hbx - hby, 0, hbz - 1),
                            bz - 1), 0)

    # Per-core lane-dense partial-sum outputs (resident across the arbitrary
    # axis); the final cross-lane reduce happens in the wrapper.
    out_shape = (jax.ShapeDtypeStruct((2 * acc_x, _LANES), jnp.float32),
                 jax.ShapeDtypeStruct((2 * acc_y, _LANES), jnp.float32),
                 jax.ShapeDtypeStruct((2 * acc_z, _LANES), jnp.float32))
    out_specs = [pl.BlockSpec((acc_x, _LANES), lambda c, i: (c, 0)),
                 pl.BlockSpec((acc_y, _LANES), lambda c, i: (c, 0)),
                 pl.BlockSpec((acc_z, _LANES), lambda c, i: (c, 0))]

    cost = pl.CostEstimate(
        flops=3 * max(n_x, 1) + max(n_y, 1) + max(n_z, 1),
        transcendentals=max(n_y, 1) + max(n_z, 1),
        bytes_accessed=(xh.size * xh.dtype.itemsize
                        + tg.size * tg.dtype.itemsize
                        + yl.size * yl.dtype.itemsize
                        + zl.size * zl.dtype.itemsize),
    )

    sse_p, ylog_p, zlog_p = pl.pallas_call(
        kernel,
        out_shape=out_shape,
        grid_spec=pltpu.PrefetchScalarGridSpec(
            num_scalar_prefetch=0,
            grid=(2, n_steps),
            in_specs=[
                pl.BlockSpec((br_x, _LANES), xmap),
                pl.BlockSpec((br_x, _LANES), xmap),
                pl.BlockSpec((br_y, _LANES), ymap),
                pl.BlockSpec((br_z, _LANES), zmap),
            ],
            out_specs=out_specs,
        ),
        compiler_params=pltpu.CompilerParams(
            dimension_semantics=("parallel", "arbitrary"),
            vmem_limit_bytes=_VMEM_LIMIT_BYTES),
        cost_estimate=cost,
    )(xh, tg, yl, zl)

    return jnp.sum(sse_p), jnp.sum(ylog_p), jnp.sum(zlog_p)


# ----------------------------------------------------------------------------
# RateDistortionLoss forward (metric='mse' path)
# ----------------------------------------------------------------------------
def rate_distortion_loss(output, target, lmbda=0.01):
    """
    output: dict with 'x_hat' [N,C,H,W] and 'likelihoods': {'y': ..., 'z': ...}
    target: [N,C,H,W]
    Returns dict with mse_loss, y_bpp, z_bpp, bpp_loss, loss (scalars, f32).
    """
    N, _, H, W = target.shape
    num_pixels = N * H * W
    n_elems = float(target.size)

    sse, y_logsum, z_logsum = _fused_rd_reductions(
        output["x_hat"], target,
        output["likelihoods"]["y"], output["likelihoods"]["z"])

    mse_loss = sse / n_elems
    distortion = (255.0 ** 2) * mse_loss

    neg_ln2_pix = -math.log(2.0) * num_pixels
    y_bpp = y_logsum / neg_ln2_pix
    z_bpp = z_logsum / neg_ln2_pix
    bpp_loss = y_bpp + z_bpp

    # only_dist is treated as False (see note at top of file).
    loss = lmbda * distortion + bpp_loss

    return {
        "mse_loss": mse_loss,
        "y_bpp": y_bpp,
        "z_bpp": z_bpp,
        "bpp_loss": bpp_loss,
        "loss": loss,
    }


# ----------------------------------------------------------------------------
# Main
# ----------------------------------------------------------------------------
if __name__ == "__main__":
    key = jax.random.PRNGKey(0)
    k_t, k_x, k_y, k_z = jax.random.split(key, 4)

    # Small shapes consistent with the module: images NCHW, latents NCHW.
    N, C, H, W = 2, 3, 16, 16
    target = jax.random.uniform(k_t, (N, C, H, W), dtype=jnp.float32)
    x_hat = jnp.clip(
        target + 0.05 * jax.random.normal(k_x, (N, C, H, W), dtype=jnp.float32),
        0.0, 1.0)

    # Likelihoods must be in (0, 1]; downsampled latent grids.
    y_lik = jax.random.uniform(k_y, (N, 8, H // 4, W // 4),
                               dtype=jnp.float32, minval=0.05, maxval=1.0)
    z_lik = jax.random.uniform(k_z, (N, 8, H // 8, W // 8),
                               dtype=jnp.float32, minval=0.05, maxval=1.0)

    output = {"x_hat": x_hat, "likelihoods": {"y": y_lik, "z": z_lik}}

    out = rate_distortion_loss(output, target, lmbda=0.01)
    jax.block_until_ready(out["loss"])

    # Reference check in plain JAX.
    ref_mse = jnp.mean((x_hat - target) ** 2)
    ref_y = jnp.sum(jnp.log(y_lik)) / (-math.log(2.0) * N * H * W)
    ref_z = jnp.sum(jnp.log(z_lik)) / (-math.log(2.0) * N * H * W)
    ref_loss = 0.01 * (255.0 ** 2) * ref_mse + ref_y + ref_z
    assert jnp.allclose(out["mse_loss"], ref_mse, rtol=1e-5, atol=1e-6)
    assert jnp.allclose(out["y_bpp"], ref_y, rtol=1e-5, atol=1e-6)
    assert jnp.allclose(out["z_bpp"], ref_z, rtol=1e-5, atol=1e-6)
    assert jnp.allclose(out["loss"], ref_loss, rtol=1e-5, atol=1e-6)

    print("KERNEL_OK")
</pallas_src>

<mosaic_0001>
module attributes {stable_mosaic.version = 11 : i64} {
  func.func @kernel(%arg0: i32, %arg1: i32, %arg2: memref<16x128xf32, #tpu.memory_space<vmem>>, %arg3: memref<16x128xf32, #tpu.memory_space<vmem>>, %arg4: memref<8x128xf32, #tpu.memory_space<vmem>>, %arg5: memref<8x128xf32, #tpu.memory_space<vmem>>, %arg6: memref<16x128xf32, #tpu.memory_space<vmem>>, %arg7: memref<8x128xf32, #tpu.memory_space<vmem>>, %arg8: memref<8x128xf32, #tpu.memory_space<vmem>>) attributes {dimension_semantics = [#tpu.dimension_semantics<parallel>, #tpu.dimension_semantics<arbitrary>], iteration_bounds = array<i64: 2, 3>, scalar_prefetch = 0 : i64, scratch_operands = 0 : i64, tpu.core_type = #tpu.core_type<tc>, window_params = [{transform_indices = @transform_0, window_bounds = array<i64: 16, 128>}, {transform_indices = @transform_1, window_bounds = array<i64: 16, 128>}, {transform_indices = @transform_2, window_bounds = array<i64: 8, 128>}, {transform_indices = @transform_3, window_bounds = array<i64: 8, 128>}, {transform_indices = @transform_4, window_bounds = array<i64: 16, 128>}, {transform_indices = @transform_5, window_bounds = array<i64: 8, 128>}, {transform_indices = @transform_6, window_bounds = array<i64: 8, 128>}]} {
    %c0_i32 = arith.constant 0 : i32
    %0 = arith.cmpi eq, %arg1, %c0_i32 : i32
    %1 = arith.extui %0 : i1 to i32
    %c0_i32_0 = arith.constant 0 : i32
    %2 = arith.cmpi ne, %1, %c0_i32_0 : i32
    scf.if %2 {
      %cst = arith.constant 0.000000e+00 : f32
      %14 = vector.broadcast %cst : f32 to vector<16x128xf32>
      %c0 = arith.constant 0 : index
      %c0_6 = arith.constant 0 : index
      %15 = vector.load %arg6[%c0, %c0_6] : memref<16x128xf32, #tpu.memory_space<vmem>>, vector<16x128xf32>
      tpu.vector_store %arg6[%c0, %c0_6], %14 {strides = array<i32>} : memref<16x128xf32, #tpu.memory_space<vmem>>, vector<16x128xf32>,
      %cst_7 = arith.constant 0.000000e+00 : f32
      %16 = vector.broadcast %cst_7 : f32 to vector<8x128xf32>
      %c0_8 = arith.constant 0 : index
      %c0_9 = arith.constant 0 : index
      %17 = vector.load %arg7[%c0_8, %c0_9] : memref<8x128xf32, #tpu.memory_space<vmem>>, vector<8x128xf32>
      tpu.vector_store %arg7[%c0_8, %c0_9], %16 {strides = array<i32>} : memref<8x128xf32, #tpu.memory_space<vmem>>, vector<8x128xf32>,
      %cst_10 = arith.constant 0.000000e+00 : f32
      %18 = vector.broadcast %cst_10 : f32 to vector<8x128xf32>
      %c0_11 = arith.constant 0 : index
      %c0_12 = arith.constant 0 : index
      %19 = vector.load %arg8[%c0_11, %c0_12] : memref<8x128xf32, #tpu.memory_space<vmem>>, vector<8x128xf32>
      tpu.vector_store %arg8[%c0_11, %c0_12], %18 {strides = array<i32>} : memref<8x128xf32, #tpu.memory_space<vmem>>, vector<8x128xf32>,
    } else {
    }
    %c1_i32 = arith.constant 1 : i32
    %3 = arith.cmpi slt, %arg1, %c1_i32 : i32
    %4 = arith.extui %3 : i1 to i32
    %c0_i32_1 = arith.constant 0 : i32
    %5 = arith.cmpi ne, %4, %c0_i32_1 : i32
    scf.if %5 {
      %c0 = arith.constant 0 : index
      %c0_6 = arith.constant 0 : index
      %14 = vector.load %arg2[%c0, %c0_6] : memref<16x128xf32, #tpu.memory_space<vmem>>, vector<16x128xf32>
      %c0_7 = arith.constant 0 : index
      %c0_8 = arith.constant 0 : index
      %15 = vector.load %arg3[%c0_7, %c0_8] : memref<16x128xf32, #tpu.memory_space<vmem>>, vector<16x128xf32>
      %16 = arith.subf %14, %15 : vector<16x128xf32>
      %17 = arith.mulf %16, %16 : vector<16x128xf32>
      %c1_i32_9 = arith.constant 1 : i32
      %18 = arith.muli %arg0, %c1_i32_9 : i32
      %c0_i32_10 = arith.constant 0 : i32
      %19 = arith.subi %arg1, %c0_i32_10 : i32
      %20 = arith.addi %18, %19 : i32
      %c1_i32_11 = arith.constant 1 : i32
      %21 = arith.addi %20, %c1_i32_11 : i32
      %c16_i32 = arith.constant 16 : i32
      %22 = arith.muli %21, %c16_i32 : i32
      %c16_i32_12 = arith.constant 16 : i32
      %23 = arith.cmpi sgt, %22, %c16_i32_12 : i32
      %true = arith.constant true
      %24 = arith.xori %23, %true : i1
      %25 = arith.extui %24 : i1 to i32
      %c0_i32_13 = arith.constant 0 : i32
      %26 = arith.cmpi ne, %25, %c0_i32_13 : i32
      scf.if %26 {
        %c0_15 = arith.constant 0 : index
        %c0_16 = arith.constant 0 : index
        %29 = vector.load %arg6[%c0_15, %c0_16] : memref<16x128xf32, #tpu.memory_space<vmem>>, vector<16x128xf32>
        %30 = arith.addf %29, %17 : vector<16x128xf32>
        %c0_17 = arith.constant 0 : index
        %c0_18 = arith.constant 0 : index
        %31 = vector.load %arg6[%c0_17, %c0_18] : memref<16x128xf32, #tpu.memory_space<vmem>>, vector<16x128xf32>
        tpu.vector_store %arg6[%c0_17, %c0_18], %30 {strides = array<i32>} : memref<16x128xf32, #tpu.memory_space<vmem>>, vector<16x128xf32>,
      } else {
      }
      %27 = arith.extui %23 : i1 to i32
      %c0_i32_14 = arith.constant 0 : i32
      %28 = arith.cmpi ne, %27, %c0_i32_14 : i32
      scf.if %28 {
        %c16_i32_15 = arith.constant 16 : i32
        %29 = arith.muli %20, %c16_i32_15 : i32
        %c16_i32_16 = arith.constant 16 : i32
        %30 = arith.subi %c16_i32_16, %29 : i32
        %31 = tpu.iota {dimensions = array<i32: 0>} : vector<16x128xi32>
        %32 = vector.broadcast %30 : i32 to vector<16x128xi32>
        %33 = arith.cmpi slt, %31, %32 : vector<16x128xi32>
        %cst = arith.constant 0.000000e+00 : f32
        %34 = vector.broadcast %cst : f32 to vector<16x128xf32>
        %35 = arith.select %33, %17, %34 : vector<16x128xi1>, vector<16x128xf32>
        %c0_17 = arith.constant 0 : index
        %c0_18 = arith.constant 0 : index
        %36 = vector.load %arg6[%c0_17, %c0_18] : memref<16x128xf32, #tpu.memory_space<vmem>>, vector<16x128xf32>
        %37 = arith.addf %36, %35 : vector<16x128xf32>
        %c0_19 = arith.constant 0 : index
        %c0_20 = arith.constant 0 : index
        %38 = vector.load %arg6[%c0_19, %c0_20] : memref<16x128xf32, #tpu.memory_space<vmem>>, vector<16x128xf32>
        tpu.vector_store %arg6[%c0_19, %c0_20], %37 {strides = array<i32>} : memref<16x128xf32, #tpu.memory_space<vmem>>, vector<16x128xf32>,
      } else {
      }
    } else {
    }
    %c1_i32_2 = arith.constant 1 : i32
    %6 = arith.cmpi sge, %arg1, %c1_i32_2 : i32
    %c2_i32 = arith.constant 2 : i32
    %7 = arith.cmpi slt, %arg1, %c2_i32 : i32
    %8 = arith.andi %6, %7 : i1
    %9 = arith.extui %8 : i1 to i32
    %c0_i32_3 = arith.constant 0 : i32
    %10 = arith.cmpi ne, %9, %c0_i32_3 : i32
    scf.if %10 {
      %c0 = arith.constant 0 : index
      %c0_6 = arith.constant 0 : index
      %14 = vector.load %arg4[%c0, %c0_6] : memref<8x128xf32, #tpu.memory_space<vmem>>, vector<8x128xf32>
      %15 = math.log %14 : vector<8x128xf32>
      %c1_i32_7 = arith.constant 1 : i32
      %16 = arith.muli %arg0, %c1_i32_7 : i32
      %c1_i32_8 = arith.constant 1 : i32
      %17 = arith.subi %arg1, %c1_i32_8 : i32
      %18 = arith.addi %16, %17 : i32
      %c1_i32_9 = arith.constant 1 : i32
      %19 = arith.addi %18, %c1_i32_9 : i32
      %c8_i32 = arith.constant 8 : i32
      %20 = arith.muli %19, %c8_i32 : i32
      %c8_i32_10 = arith.constant 8 : i32
      %21 = arith.cmpi sgt, %20, %c8_i32_10 : i32
      %true = arith.constant true
      %22 = arith.xori %21, %true : i1
      %23 = arith.extui %22 : i1 to i32
      %c0_i32_11 = arith.constant 0 : i32
      %24 = arith.cmpi ne, %23, %c0_i32_11 : i32
      scf.if %24 {
        %c0_13 = arith.constant 0 : index
        %c0_14 = arith.constant 0 : index
        %27 = vector.load %arg7[%c0_13, %c0_14] : memref<8x128xf32, #tpu.memory_space<vmem>>, vector<8x128xf32>
        %28 = arith.addf %27, %15 : vector<8x128xf32>
        %c0_15 = arith.constant 0 : index
        %c0_16 = arith.constant 0 : index
        %29 = vector.load %arg7[%c0_15, %c0_16] : memref<8x128xf32, #tpu.memory_space<vmem>>, vector<8x128xf32>
        tpu.vector_store %arg7[%c0_15, %c0_16], %28 {strides = array<i32>} : memref<8x128xf32, #tpu.memory_space<vmem>>, vector<8x128xf32>,
      } else {
      }
      %25 = arith.extui %21 : i1 to i32
      %c0_i32_12 = arith.constant 0 : i32
      %26 = arith.cmpi ne, %25, %c0_i32_12 : i32
      scf.if %26 {
        %c8_i32_13 = arith.constant 8 : i32
        %27 = arith.muli %18, %c8_i32_13 : i32
        %c8_i32_14 = arith.constant 8 : i32
        %28 = arith.subi %c8_i32_14, %27 : i32
        %29 = tpu.iota {dimensions = array<i32: 0>} : vector<8x128xi32>
        %30 = vector.broadcast %28 : i32 to vector<8x128xi32>
        %31 = arith.cmpi slt, %29, %30 : vector<8x128xi32>
        %cst = arith.constant 0.000000e+00 : f32
        %32 = vector.broadcast %cst : f32 to vector<8x128xf32>
        %33 = arith.select %31, %15, %32 : vector<8x128xi1>, vector<8x128xf32>
        %c0_15 = arith.constant 0 : index
        %c0_16 = arith.constant 0 : index
        %34 = vector.load %arg7[%c0_15, %c0_16] : memref<8x128xf32, #tpu.memory_space<vmem>>, vector<8x128xf32>
        %35 = arith.addf %34, %33 : vector<8x128xf32>
        %c0_17 = arith.constant 0 : index
        %c0_18 = arith.constant 0 : index
        %36 = vector.load %arg7[%c0_17, %c0_18] : memref<8x128xf32, #tpu.memory_space<vmem>>, vector<8x128xf32>
        tpu.vector_store %arg7[%c0_17, %c0_18], %35 {strides = array<i32>} : memref<8x128xf32, #tpu.memory_space<vmem>>, vector<8x128xf32>,
      } else {
      }
    } else {
    }
    %c2_i32_4 = arith.constant 2 : i32
    %11 = arith.cmpi sge, %arg1, %c2_i32_4 : i32
    %12 = arith.extui %11 : i1 to i32
    %c0_i32_5 = arith.constant 0 : i32
    %13 = arith.cmpi ne, %12, %c0_i32_5 : i32
    scf.if %13 {
      %c0 = arith.constant 0 : index
      %c0_6 = arith.constant 0 : index
      %14 = vector.load %arg5[%c0, %c0_6] : memref<8x128xf32, #tpu.memory_space<vmem>>, vector<8x128xf32>
      %15 = math.log %14 : vector<8x128xf32>
      %c1_i32_7 = arith.constant 1 : i32
      %16 = arith.muli %arg0, %c1_i32_7 : i32
      %c2_i32_8 = arith.constant 2 : i32
      %17 = arith.subi %arg1, %c2_i32_8 : i32
      %18 = arith.addi %16, %17 : i32
      %c1_i32_9 = arith.constant 1 : i32
      %19 = arith.addi %18, %c1_i32_9 : i32
      %c8_i32 = arith.constant 8 : i32
      %20 = arith.muli %19, %c8_i32 : i32
      %c8_i32_10 = arith.constant 8 : i32
      %21 = arith.cmpi sgt, %20, %c8_i32_10 : i32
      %true = arith.constant true
      %22 = arith.xori %21, %true : i1
      %23 = arith.extui %22 : i1 to i32
      %c0_i32_11 = arith.constant 0 : i32
      %24 = arith.cmpi ne, %23, %c0_i32_11 : i32
      scf.if %24 {
        %c0_13 = arith.constant 0 : index
        %c0_14 = arith.constant 0 : index
        %27 = vector.load %arg8[%c0_13, %c0_14] : memref<8x128xf32, #tpu.memory_space<vmem>>, vector<8x128xf32>
        %28 = arith.addf %27, %15 : vector<8x128xf32>
        %c0_15 = arith.constant 0 : index
        %c0_16 = arith.constant 0 : index
        %29 = vector.load %arg8[%c0_15, %c0_16] : memref<8x128xf32, #tpu.memory_space<vmem>>, vector<8x128xf32>
        tpu.vector_store %arg8[%c0_15, %c0_16], %28 {strides = array<i32>} : memref<8x128xf32, #tpu.memory_space<vmem>>, vector<8x128xf32>,
      } else {
      }
      %25 = arith.extui %21 : i1 to i32
      %c0_i32_12 = arith.constant 0 : i32
      %26 = arith.cmpi ne, %25, %c0_i32_12 : i32
      scf.if %26 {
        %c8_i32_13 = arith.constant 8 : i32
        %27 = arith.muli %18, %c8_i32_13 : i32
        %c8_i32_14 = arith.constant 8 : i32
        %28 = arith.subi %c8_i32_14, %27 : i32
        %29 = tpu.iota {dimensions = array<i32: 0>} : vector<8x128xi32>
        %30 = vector.broadcast %28 : i32 to vector<8x128xi32>
        %31 = arith.cmpi slt, %29, %30 : vector<8x128xi32>
        %cst = arith.constant 0.000000e+00 : f32
        %32 = vector.broadcast %cst : f32 to vector<8x128xf32>
        %33 = arith.select %31, %15, %32 : vector<8x128xi1>, vector<8x128xf32>
        %c0_15 = arith.constant 0 : index
        %c0_16 = arith.constant 0 : index
        %34 = vector.load %arg8[%c0_15, %c0_16] : memref<8x128xf32, #tpu.memory_space<vmem>>, vector<8x128xf32>
        %35 = arith.addf %34, %33 : vector<8x128xf32>
        %c0_17 = arith.constant 0 : index
        %c0_18 = arith.constant 0 : index
        %36 = vector.load %arg8[%c0_17, %c0_18] : memref<8x128xf32, #tpu.memory_space<vmem>>, vector<8x128xf32>
        tpu.vector_store %arg8[%c0_17, %c0_18], %35 {strides = array<i32>} : memref<8x128xf32, #tpu.memory_space<vmem>>, vector<8x128xf32>,
      } else {
      }
    } else {
    }
    return
  }
  func.func @transform_0(%arg0: i32, %arg1: i32) -> (i32, i32) {
    %c1_i32 = arith.constant 1 : i32
    %0 = arith.muli %arg0, %c1_i32 : i32
    %c0_i32 = arith.constant 0 : i32
    %1 = arith.minsi %arg1, %c0_i32 : i32
    %2 = arith.addi %0, %1 : i32
    %c0_i32_0 = arith.constant 0 : i32
    %3 = arith.minsi %2, %c0_i32_0 : i32
    %c0_i32_1 = arith.constant 0 : i32
    %c0_i32_2 = arith.constant 0 : i32
    return %3, %c0_i32_1 : i32, i32
  }
  func.func @transform_1(%arg0: i32, %arg1: i32) -> (i32, i32) {
    %c1_i32 = arith.constant 1 : i32
    %0 = arith.muli %arg0, %c1_i32 : i32
    %c0_i32 = arith.constant 0 : i32
    %1 = arith.minsi %arg1, %c0_i32 : i32
    %2 = arith.addi %0, %1 : i32
    %c0_i32_0 = arith.constant 0 : i32
    %3 = arith.minsi %2, %c0_i32_0 : i32
    %c0_i32_1 = arith.constant 0 : i32
    %c0_i32_2 = arith.constant 0 : i32
    return %3, %c0_i32_1 : i32, i32
  }
  func.func @transform_2(%arg0: i32, %arg1: i32) -> (i32, i32) {
    %c1_i32 = arith.constant 1 : i32
    %0 = arith.muli %arg0, %c1_i32 : i32
    %c1_i32_0 = arith.constant 1 : i32
    %1 = arith.subi %arg1, %c1_i32_0 : i32
    %c0_i32 = arith.constant 0 : i32
    %c0_i32_1 = arith.constant 0 : i32
    %2 = arith.maxsi %c0_i32, %1 : i32
    %3 = arith.minsi %c0_i32_1, %2 : i32
    %4 = arith.addi %0, %3 : i32
    %c0_i32_2 = arith.constant 0 : i32
    %5 = arith.minsi %4, %c0_i32_2 : i32
    %c0_i32_3 = arith.constant 0 : i32
    %c0_i32_4 = arith.constant 0 : i32
    return %5, %c0_i32_3 : i32, i32
  }
  func.func @transform_3(%arg0: i32, %arg1: i32) -> (i32, i32) {
    %c1_i32 = arith.constant 1 : i32
    %0 = arith.muli %arg0, %c1_i32 : i32
    %c1_i32_0 = arith.constant 1 : i32
    %1 = arith.subi %arg1, %c1_i32_0 : i32
    %c1_i32_1 = arith.constant 1 : i32
    %2 = arith.subi %1, %c1_i32_1 : i32
    %c0_i32 = arith.constant 0 : i32
    %c0_i32_2 = arith.constant 0 : i32
    %3 = arith.maxsi %c0_i32, %2 : i32
    %4 = arith.minsi %c0_i32_2, %3 : i32
    %5 = arith.addi %0, %4 : i32
    %c0_i32_3 = arith.constant 0 : i32
    %6 = arith.minsi %5, %c0_i32_3 : i32
    %c0_i32_4 = arith.constant 0 : i32
    %c0_i32_5 = arith.constant 0 : i32
    return %6, %c0_i32_4 : i32, i32
  }
  func.func @transform_4(%arg0: i32, %arg1: i32) -> (i32, i32) {
    %c0_i32 = arith.constant 0 : i32
    %c0_i32_0 = arith.constant 0 : i32
    return %arg0, %c0_i32 : i32, i32
  }
  func.func @transform_5(%arg0: i32, %arg1: i32) -> (i32, i32) {
    %c0_i32 = arith.constant 0 : i32
    %c0_i32_0 = arith.constant 0 : i32
    return %arg0, %c0_i32 : i32, i32
  }
  func.func @transform_6(%arg0: i32, %arg1: i32) -> (i32, i32) {
    %c0_i32 = arith.constant 0 : i32
    %c0_i32_0 = arith.constant 0 : i32
    return %arg0, %c0_i32 : i32, i32
  }
}

</mosaic_0001>

<bundles_post_ra>
// kernel: tpu_custom_call.1
= control target key start
LH: loop header
LB: loop body
LE: loop exit
PB: predicated region body
PF: predicated region fallthrough
CT: control target
= control target key end

     0   :  { %s1951_s0 = inlined_call_operand.hbm [shape: f32[16,128], index: 0, kind: input, shape index: {}]   ;;  %s1952_s1 = inlined_call_operand.hbm [shape: f32[16,128], index: 1, kind: input, shape index: {}]   ;;  %s1953_s2 = inlined_call_operand.hbm [shape: f32[8,128], index: 2, kind: input, shape index: {}]   ;;  %s1954_s3 = inlined_call_operand.hbm [shape: f32[8,128], index: 3, kind: input, shape index: {}]   ;;  %s1955_s4 = inlined_call_operand.hbm [shape: f32[32,128], index: 4, kind: output, shape index: {0}]   ;;  %s1956_s5 = inlined_call_operand.hbm [shape: f32[16,128], index: 5, kind: output, shape index: {1}]   ;;  %s1957_s6 = inlined_call_operand.hbm [shape: f32[16,128], index: 6, kind: output, shape index: {2}]  }
   0x1   :  { %1969 = sst [smem:[#allocation24_spill]] %s1951_s0 }
   0x2   :  { %1970 = sst [smem:[#allocation25_spill]] %s1952_s1 }
   0x3   :  { %1971 = sst [smem:[#allocation26_spill]] %s1953_s2 }
   0x4   :  { %1972 = sst [smem:[#allocation27_spill]] %s1955_s4 }
   0x5   :  { %1973 = sst [smem:[#allocation28_spill]] %s1957_s6 }
   0x6   :  { %12 = vsyncpa [#allocation3], 0 }
   0x7   :  { %14 = vsyncpa [#allocation3 + $0x1], 0 }
   0x8   :  { %15 = vsyncpa [#allocation6], 0 }
   0x9   :  { %17 = vsyncpa [#allocation6 + $0x1], 0 }
   0xa   :  { %18 = vsyncpa [#allocation9], 0 }
   0xb   :  { %20 = vsyncpa [#allocation9 + $0x1], 0 }
   0xc   :  { %21 = vsyncpa [#allocation4], 0 }
   0xd   :  { %23 = vsyncpa [#allocation4 + $0x1], 0 }
   0xe   :  { %24 = vsyncpa [#allocation12], 0 }
   0xf   :  { %26 = vsyncpa [#allocation12 + $0x1], 0  ;;  %s1518_s21 = smov 0   ;;  %s1520_s22 = smov 0  }
  0x10   :  { %s1522_s23 = smov 0   ;;  %s1524_s24 = smov 0  }
  0x11   :  { %s1526_s25 = smov 0   ;;  %s1528_s26 = smov 0  }
  0x12   :  { %s1530_s27 = smov 0   ;;  %s1532_s28 = smov 0  }
  0x13   :  { %s1534_s29 = smov 0   ;;  %s1536_s30 = smov 0  }
  0x14   :  { %s1538_s7 = smov 0   ;;  %s1540_s8 = smov 0  }
  0x15 LB: > { %1974 = sst [smem:[#allocation20_spill]] %s1461_s30  ;;  %s41_s9 = sadd.s32 1, %s1461_s30  ;;  %s1469_s8 = sphi %s1540_s8, %s32_s8   ;;  %s1465_s7 = sphi %s1538_s7, %s2008_s7   ;;  %s1461_s30 = sphi %s1536_s30, %s2007_s30   ;;  %s1457_s29 = sphi %s1534_s29, %s2006_s29   ;;  %s1453_s28 = sphi %s1532_s28, %s2005_s28   ;;  %s1449_s27 = sphi %s1530_s27, %s1935_s27   ;;  %s1445_s26 = sphi %s1528_s26, %s2013_s26   ;;  %s1441_s25 = sphi %s1526_s25, %s1930_s25   ;;  %s1437_s24 = sphi %s1524_s24, %s2012_s24   ;;  %s1433_s23 = sphi %s1522_s23, %s2011_s23   ;;  %s1429_s22 = sphi %s1520_s22, %s2010_s22   ;;  %s1425_s21 = sphi %s1518_s21, %s2009_s21  }
  0x16   : > { %1975 = sst [smem:[#allocation21_spill]] %s1465_s7  ;;  %s44_s10 = sadd.s32 1, %s1465_s7 }
  0x17   : > { %p42_p0 = scmp.ge.s32.totalorder %s41_s9, 3  ;;  %p1421_p1 = scmp.ne.s32.totalorder %s1449_s27, 0 }
  0x18   : > { %p1960_p3 = scmp.eq.s32.totalorder %s1469_s8, 0  ;;  %p1959_p7 = scmp.lt.s32.totalorder %s1469_s8, 6 }
  0x19   : > { %s2015_s9 = smov (%p42_p0, %s41_s9), 0  ;;  %s2017_s10 = smov (!%p42_p0, %s44_s10), %s1465_s7 }
  0x1a   : > { %1976 = sst [smem:[#allocation22_spill]] %s2015_s9  ;;  %p46_p2 = scmp.ge.s32.totalorder %s2017_s10, 2 }
  0x1b   : > { %p70_p4 = por %p1421_p1, %p1960_p3  ;;  %s322_s14 = sand.u32 1, %s1469_s8  }
  0x1c   : > { %s2019_s10 = smov (%p46_p2, %s2017_s10), 0  ;;  %s1471_s15 = smov [#allocation5]  }
  0x1d   : > { %1977 = sst [smem:[#allocation23_spill]] %s2019_s10  ;;  %s204_s11 = ssub.s32 %s1465_s7, %s2019_s10 }
  0x1e   : > { %p1593_p6 = scmp.eq.s32.totalorder %s204_s11, 0  ;;  %p1600_p8 = pnand %p1959_p7, %p70_p4 }
  0x1f   : > { %s338_s16 = sshll.u32 %s1471_s15, 4  ;;  %s1607_s17 = scalar_lea.sflag [#allocation6], %s322_s14  ;;  %s339_s16 = int_to_ptr.vmem [resolvable:$true] %s338_s16 }
  0x20   : > { %s1978_s12 = scalar_select %p1593_p6, 1, 0 }
  0x21   : > { %s1980_s1 = sld [smem:[#allocation25_spill]]  ;;  %p1153_p12 = pneg %p1600_p8 }
  0x27   : > { %s1151_s20 = scalar_lea.hbm %s1980_s1, 256 }
  0x28   : > { %p1152_p11 = scmp.ne.s32.totalorder %s1980_s1, %s1151_s20  ;;  %p1158_p1 = scmp.lt.s32.totalorder %s1151_s20, %s1151_s20 }
  0x2a   : > { %p1154_p13 = pnand %p1153_p12, %p1152_p11 }
  0x2c   : > { %p1155_p0 = pneg %p1154_p13 }
  0x2e   : > { %p1160_p2 = pnand %p1158_p1, %p1155_p0 }
  0x30   : > { %1163 = shalt.err (!%p1160_p2)
}
  0x31   : > { %s1164_s15 = scalar_lea.vmem %s339_s16, 256  ;;  %s1171_s14 = scalar_lea.vmem %s339_s16, 512 }
  0x32   : > { %p1165_p4 = scmp.ne.s32.totalorder %s339_s16, %s1164_s15  ;;  %p1172_p5 = scmp.lt.s32.totalorder %s339_s16, %s339_s16 }
  0x33   : > { %p1173_p9 = scmp.lt.s32.totalorder %s1171_s14, %s1164_s15 }
  0x34   : > { %p1167_p7 = pnand %p1165_p4, %p1153_p12 }
  0x35   : > { %p1174_p10 = por %p1173_p9, %p1172_p5 }
  0x36   : > { %p1168_p3 = pneg %p1167_p7 }
  0x38   : > { %p1175_p6 = pnand %p1174_p10, %p1168_p3 }
  0x3a   : > { %1178 = shalt.err (!%p1175_p6)
}
  0x3b   : > { %s1472_s10 = smov 128   ;;  %s1473_s18 = smov 8  }
  0x3c   : > { %1011 = dma.hbm_to_vmem [thread:$0]  (!%p1600_p8), %s1980_s1, 256, %s339_s16, %s1607_s17, %s1472_s10, %s1472_s10, %s1473_s18  }
  0x3d   : > { %p1981_p11 = scmp.lt.s32.totalorder %s1469_s8, 7  ;;  %p1982_p7 = scmp.ge.s32.totalorder %s1469_s8, 1 }
  0x3e   : > { %s1474_s15 = smov [#allocation2]   ;;  %s1984_s0 = sld [smem:[#allocation24_spill]] }
  0x3f   : > { %p1633_p13 = pnand %p1982_p7, %p1981_p11  ;;  %s312_s14 = sshll.u32 %s1474_s15, 4  ;;  %s313_s14 = int_to_ptr.vmem [resolvable:$true] %s312_s14 }
  0x41   : > { %s1983_s11 = scalar_select %p1633_p13, 1, 0 }
  0x44   : > { %s1179_s30 = scalar_lea.hbm %s1984_s0, 256 }
  0x45   : > { %p1180_p3 = scmp.ne.s32.totalorder %s1984_s0, %s1179_s30  ;;  %p1186_p9 = scmp.lt.s32.totalorder %s1179_s30, %s1179_s30 }
  0x47   : > { %p1182_p5 = pnand %p1180_p3, %p1153_p12 }
  0x49   : > { %p1183_p6 = pneg %p1182_p5 }
  0x4b   : > { %p1188_p10 = pnand %p1186_p9, %p1183_p6 }
  0x4d   : > { %1191 = shalt.err (!%p1188_p10)
}
  0x4e   : > { %s1192_s16 = scalar_lea.vmem %s313_s14, 256  ;;  %s1199_s7 = scalar_lea.vmem %s313_s14, 512 }
  0x4f   : > { %p1193_p0 = scmp.ne.s32.totalorder %s313_s14, %s1192_s16  ;;  %p1200_p4 = scmp.lt.s32.totalorder %s313_s14, %s313_s14 }
  0x50   : > { %p1201_p11 = scmp.lt.s32.totalorder %s1199_s7, %s1192_s16 }
  0x51   : > { %p1195_p1 = pnand %p1193_p0, %p1153_p12 }
  0x52   : > { %p1202_p7 = por %p1201_p11, %p1200_p4 }
  0x53   : > { %p1196_p2 = pneg %p1195_p1 }
  0x55   : > { %p1203_p13 = pnand %p1202_p7, %p1196_p2 }
  0x57   : > { %1206 = shalt.err (!%p1203_p13)
}
  0x58   : > { %1008 = dma.hbm_to_vmem [thread:$0]  (!%p1600_p8), %s1984_s0, 256, %s313_s14, [#allocation3], %s1472_s10, %s1472_s10, %s1473_s18  }
  0x59   : > { %s1655_s30 = sadd.s32 4294967295, %s1469_s8   ;;  %s1968_s9 = sadd.s32 4294967294, %s1469_s8  }
  0x5a   : > { %p75_p12 = scmp.eq.s32.totalorder %s1655_s30, 0  ;;  %p1985_p13 = scmp.ne.s32.totalorder %s1449_s27, %s1445_s26 }
  0x5b   : > { %p1422_p5 = scmp.ne.s32.totalorder %s1441_s25, 0  ;;  %p1987_p6 = scmp.eq.s32.totalorder %s1469_s8, 0 }
  0x5c   : > { %p1662_p3 = por %p75_p12, %p1985_p13  ;;  %p152_p8 = scmp.ne.s32.totalorder %s1441_s25, %s1437_s24 }
  0x5d   : > { %p1669_p9 = por %p1422_p5, %p1987_p6  ;;  %s207_s10 = sadd.s32 1, %s1433_s23 }
  0x5e   : > { %s1986_s13 = scalar_select %p1662_p3, 1, 0 }
  0x5f   : > { %p1676_p10 = por %p152_p8, %p75_p12  ;;  %p1990_p0 = scmp.ne.s32.totalorder %s1978_s12, 0 }
  0x60   : > { %p217_p1 = scmp.ne.s32.totalorder %s1433_s23, %s1429_s22  ;;  %p218_p2 = scmp.eq.s32.totalorder %s1655_s30, 5 }
  0x61   : > { %s1989_s18 = scalar_select %p1676_p10, 1, 0 }
  0x62   : > { %s1683_s26 = scalar_select %p1990_p0, %s1433_s23, %s207_s10  }
  0x63   : > { %p223_p4 = scmp.ne.s32.totalorder %s1429_s22, %s1425_s21  ;;  %p224_p11 = scmp.eq.s32.totalorder %s1968_s9, 5 }
  0x64   : > { %p1692_p7 = por %p218_p2, %p217_p1  ;;  %s1475_s24 = smov [#allocation7]  }
  0x65   : > { %p1696_p13 = por %p224_p11, %p223_p4  ;;  %s367_s14 = sshll.u32 %s1475_s24, 4  ;;  %s368_s14 = int_to_ptr.vmem [resolvable:$true] %s367_s14 }
  0x66   : > { %s1991_s20 = scalar_select %p1692_p7, 1, 0 }
  0x67   : > { %s1992_s15 = scalar_select %p1696_p13, 1, 0 }
  0x68   : > { %p1993_p12 = scmp.lt.s32.totalorder %s1469_s8, 6  ;;  %s1995_s2 = sld [smem:[#allocation26_spill]] }
  0x6a   : > { %p1704_p5 = pnand %p1993_p12, %p1669_p9 }
  0x6c   : > { %p1209_p8 = pneg %p1704_p5 }
  0x6e   : > { %s1207_s4 = scalar_lea.hbm %s1995_s2, 128 }
  0x6f   : > { %p1208_p6 = scmp.ne.s32.totalorder %s1995_s2, %s1207_s4  ;;  %p1214_p9 = scmp.lt.s32.totalorder %s1207_s4, %s1207_s4 }
  0x71   : > { %p1210_p0 = pnand %p1209_p8, %p1208_p6 }
  0x73   : > { %p1211_p1 = pneg %p1210_p0 }
  0x75   : > { %p1216_p2 = pnand %p1214_p9, %p1211_p1 }
  0x77   : > { %1219 = shalt.err (!%p1216_p2)
}
  0x78   : > { %s1220_s19 = scalar_lea.vmem %s368_s14, 128  ;;  %s1227_s24 = scalar_lea.vmem %s368_s14, 256 }
  0x79   : > { %p1221_p4 = scmp.ne.s32.totalorder %s368_s14, %s1220_s19  ;;  %p1228_p13 = scmp.lt.s32.totalorder %s368_s14, %s368_s14 }
  0x7a   : > { %p1229_p7 = scmp.lt.s32.totalorder %s1227_s24, %s1220_s19 }
  0x7b   : > { %p1223_p11 = pnand %p1221_p4, %p1209_p8 }
  0x7c   : > { %p1230_p10 = por %p1229_p7, %p1228_p13 }
  0x7d   : > { %p1224_p12 = pneg %p1223_p11 }
  0x7f   : > { %p1231_p3 = pnand %p1230_p10, %p1224_p12 }
  0x81   : > { %1234 = shalt.err (!%p1231_p3)
}
  0x82   : > { %1014 = dma.hbm_to_vmem [thread:$0]  (!%p1704_p5), %s1995_s2, 128, %s368_s14, %s1607_s17  }
  0x83   : > { %s1476_s4 = smov [#allocation8]   ;;  %s1235_s0 = scalar_lea.hbm %s1954_s3, 128 }
  0x84   : > { %s393_s6 = sshll.u32 %s1476_s4, 4  ;;  %p1236_p10 = scmp.ne.s32.totalorder %s1954_s3, %s1235_s0  ;;  %s394_s6 = int_to_ptr.vmem [resolvable:$true] %s393_s6 }
  0x85   : > { %p1242_p13 = scmp.lt.s32.totalorder %s1235_s0, %s1235_s0 }
  0x86   : > { %p1238_p3 = pnand %p1236_p10, %p1209_p8 }
  0x88   : > { %p1239_p7 = pneg %p1238_p3 }
  0x8a   : > { %p1244_p6 = pnand %p1242_p13, %p1239_p7 }
  0x8c   : > { %1247 = shalt.err (!%p1244_p6)
}
  0x8d   : > { %s1248_s24 = scalar_lea.vmem %s394_s6, 128  ;;  %s1255_s17 = scalar_lea.vmem %s394_s6, 256 }
  0x8e   : > { %p1249_p0 = scmp.ne.s32.totalorder %s394_s6, %s1248_s24  ;;  %p1256_p2 = scmp.lt.s32.totalorder %s394_s6, %s394_s6 }
  0x8f   : > { %p1257_p4 = scmp.lt.s32.totalorder %s1255_s17, %s1248_s24 }
  0x90   : > { %p1251_p1 = pnand %p1249_p0, %p1209_p8 }
  0x91   : > { %p1258_p11 = por %p1257_p4, %p1256_p2 }
  0x92   : > { %p1252_p9 = pneg %p1251_p1 }
  0x94   : > { %p1259_p12 = pnand %p1258_p11, %p1252_p9 }
  0x96   : > { %1262 = shalt.err (!%p1259_p12)
}
  0x97   : > { %1017 = dma.hbm_to_vmem [thread:$0]  (!%p1704_p5), %s1954_s3, 128, %s394_s6, [#allocation9]  }
  0x98   : > { %p1996_p10 = scmp.ne.s32.totalorder %s1983_s11, 0 }
  0x99   : > { %s404_s0 = sand.u32 (!%p1996_p10), 1, %s1449_s27   ;;  %p1997_p8 = scmp.ne.s32.totalorder (!%p1996_p10), %s1986_s13, 0 }
  0x9a   : > { %402 = sbr.rel (%p1996_p10) target bundleno = 372 (0x174), region = 36  ;;  %s1748_s14 = sshll.u32 (!%p1996_p10), %s404_s0, 4 }
  0x9b   : > { %s405_s16 = scalar_lea.sflag (!%p1996_p10), [#allocation3], %s404_s0  ;;  %s408_s7 = scalar_lea.vmem (!%p1996_p10), [#allocation2], %s1748_s14 }
  0x9f   : > { %1398 = dma.done.wait (%p1997_p8), %s405_s16, 256  }
  0xa0   : > { %1400 = vsyncadd (%p1997_p8), %s405_s16, 4294967040  ;;  %s413_s12 = sand.u32 1, %s1655_s30   ;;  %s417_s4 = scalar_lea.vmem [#allocation5], %s1748_s14 }
  0xa1   : > { %s414_s11 = scalar_lea.sflag [#allocation6], %s413_s12 }
  0xa2   : > { %1402 = dma.done.wait (%p1997_p8), %s414_s11, 256  }
  0xa3   : > { %1404 = vsyncadd (%p1997_p8), %s414_s11, 4294967040  ;;  %s424_s6 = sand.u32 1, %s1441_s25   ;;  %p1998_p5 = scmp.ne.s32.totalorder %s1989_s18, 0 }
  0xa4   : > { %s1764_s10 = sshll.u32 %s424_s6, 3 }
  0xa5   : > { %s426_s19 = scalar_lea.vmem [#allocation7], %s1764_s10 }
  0xa6   : > { %1406 = dma.done.wait (%p1998_p5), %s414_s11, 128  }
  0xa7   : > { %1408 = vsyncadd (%p1998_p5), %s414_s11, 4294967168  ;;  %s432_s24 = scalar_lea.sflag [#allocation9], %s424_s6  ;;  %s435_s17 = scalar_lea.vmem [#allocation8], %s1764_s10 }
  0xa8   : > { %1410 = dma.done.wait (%p1998_p5), %s432_s24, 128  }
  0xa9   : > { %1412 = vsyncadd (%p1998_p5), %s432_s24, 4294967168  ;;  %s1777_s13 = sand.u32 1, %s1429_s22   ;;  %p956_p3 = scmp.ne.s32.totalorder %s1453_s28, 0 }
  0xaa   : > { %s953_s1 = sshll.u32 %s1777_s13, 4  ;;  %s954_s9 = sshll.u32 %s1777_s13, 3 }
  0xab   : > { %s1781_s0 = scalar_lea.vmem [#allocation10], %s953_s1  ;;  %s1783_s16 = scalar_lea.vmem [#allocation11], %s954_s9 }
  0xac   : > { %s1785_s11 = scalar_lea.vmem [#allocation13], %s954_s9  ;;  %521 = sbr.rel (%p956_p3) target bundleno = 180 (0xb4), region = 56 }
  0xb1   : > { %v1477_v0 = vmov 0.0  }
  0xb2   : > { %522 = vst [vmem:[%s1781_s0] sm:$0xff] %v1477_v0  ;;  %523 = vst [vmem:[%s1781_s0 + $0x8] sm:$0xff] %v1477_v0 }
  0xb3   : > { %524 = vst [vmem:[%s1783_s16] sm:$0xff] %v1477_v0  ;;  %525 = vst [vmem:[%s1785_s11] sm:$0xff] %v1477_v0 }
  0xb4 PF: > { %p957_p7 = scmp.ge.s32.totalorder %s1453_s28, 1 }
  0xb5   : > { %s538_s18 = sadd.s32 (!%p957_p7), %s1453_s28, %s1457_s29 }
  0xb6   : > { %529 = sbr.rel (%p957_p7) target bundleno = 214 (0xd6), region = 60  ;;  %s984_s6 = sshll.u32 (!%p957_p7), %s538_s18, 4 }
  0xb7   : > { %s985_s24 = sadd.s32 (!%p957_p7), 16, %s984_s6 }
  0xb8   : > { %p959_p13 = scmp.gt.s32.totalorder (!%p957_p7), %s985_s24, 16 }
  0xbb   : > { %v530_v1 = vld [vmem:[%s408_s7] sm:$0xff]  ;;  %v531_v2 = vld [vmem:[%s408_s7 + $0x8] sm:$0xff]  ;;  %545 = sbr.rel (%p959_p13) target bundleno = 196 (0xc4), region = 64 }
  0xbc   : > { %v532_v3 = vld [vmem:[%s417_s4] sm:$0xff]  ;;  %v533_v4 = vld [vmem:[%s417_s4 + $0x8] sm:$0xff] }
  0xbd   : > { %v534_v5 = vsub.f32 %v530_v1, %v532_v3  ;;  %v535_v6 = vsub.f32 %v531_v2, %v533_v4 }
  0xbf   : > { %v536_v7 = vmul.f32 %v534_v5, %v534_v5  ;;  %v537_v8 = vmul.f32 %v535_v6, %v535_v6 }
  0xc0   : > { %v546_v9 = vld [vmem:[%s1781_s0] sm:$0xff]  ;;  %v547_v10 = vld [vmem:[%s1781_s0 + $0x8] sm:$0xff] }
  0xc1   : > { %v548_v11 = vadd.f32 %v546_v9, %v536_v7  ;;  %v549_v12 = vadd.f32 %v547_v10, %v537_v8 }
  0xc3   : > { %550 = vst [vmem:[%s1781_s0] sm:$0xff] %v548_v11  ;;  %551 = vst [vmem:[%s1781_s0 + $0x8] sm:$0xff] %v549_v12 }
  0xc4 PF: > { %p960_p6 = scmp.le.s32.totalorder %s985_s24, 16 }
  0xc5   : > { %s556_s14 = ssub.s32 (!%p960_p6), 16, %s984_s6 }
  0xc6   : > { %554 = sbr.rel (%p960_p6) target bundleno = 214 (0xd6), region = 68 }
  0xcb   : > { %v557_v13 = vlaneseq  ;;  %v560_v14 = vstv %s556_s14  ;;  %v565_v16 = vld [vmem:[%s1781_s0] sm:$0xff]  ;;  %v566_v19 = vld [vmem:[%s1781_s0 + $0x8] sm:$0xff] }
  0xcd   : > { %v558_v15 = vshrl.u32 %v557_v13, 7 }
  0xcf   : > { %vm561_vm0 = vcmp.lt.s32.totalorder %v558_v15, %v560_v14  ;;  %v559_v17 = vadd.s32 8, %v558_v15 }
  0xd0   : > { %v563_v18 = vsel %vm561_vm0, %v536_v7, 0.0 }
  0xd1   : > { %v567_v20 = vadd.f32 %v565_v16, %v563_v18  ;;  %vm562_vm1 = vcmp.lt.s32.totalorder %v559_v17, %v560_v14 }
  0xd2   : > { %v564_v21 = vsel %vm562_vm1, %v537_v8, 0.0 }
  0xd3   : > { %569 = vst [vmem:[%s1781_s0] sm:$0xff] %v567_v20  ;;  %v568_v22 = vadd.f32 %v566_v19, %v564_v21 }
  0xd5   : > { %570 = vst [vmem:[%s1781_s0 + $0x8] sm:$0xff] %v568_v22 }
  0xd6 PF: > { %p572_p0 = scmp.lt.s32.totalorder %s1453_s28, 2 }
  0xd8   : > { %p573_p1 = pnand %p957_p7, %p572_p0 }
  0xd9   : > { %s962_s7 = sadd.s32 (!%p573_p1), 4294967295, %s1453_s28 }
  0xda   : > { %576 = sbr.rel (%p573_p1) target bundleno = 259 (0x103), region = 72  ;;  %s581_s4 = sadd.s32 (!%p573_p1), %s1457_s29, %s962_s7 }
  0xdb   : > { %s986_s1 = sshll.u32 (!%p573_p1), %s581_s4, 3 }
  0xdc   : > { %s987_s9 = sadd.s32 (!%p573_p1), 8, %s986_s1 }
  0xdd   : > { %p964_p9 = scmp.gt.s32.totalorder (!%p573_p1), %s987_s9, 8 }
  0xdf   : > { %v577_v23 = vld [vmem:[%s426_s19] sm:$0xff] }
  0xe0   : > { %1147 = vlog2.f32 %v577_v23 }
  0xea   : > { %588 = sbr.rel (%p964_p9) target bundleno = 243 (0xf3), region = 76 }
  0xed   : > { %v1148_v24 = vpop.eup %1147 }
  0xee   : > { %v579_v25 = vmul.f32 0.6931472, %v1148_v24 }
  0xef   : > { %v589_v26 = vld [vmem:[%s1783_s16] sm:$0xff] }
  0xf0   : > { %v590_v27 = vadd.f32 %v589_v26, %v579_v25 }
  0xf2   : > { %591 = vst [vmem:[%s1783_s16] sm:$0xff] %v590_v27 }
  0xf3 PF: > { %p965_p2 = scmp.le.s32.totalorder %s987_s9, 8 }
  0xf4   : > { %s596_s18 = ssub.s32 (!%p965_p2), 8, %s986_s1 }
  0xf5   : > { %594 = sbr.rel (%p965_p2) target bundleno = 259 (0x103), region = 80 }
  0xfa   : > { %v597_v28 = vlaneseq  ;;  %v599_v29 = vstv %s596_s18  ;;  %v602_v31 = vld [vmem:[%s1783_s16] sm:$0xff] }
  0xfc   : > { %v598_v30 = vshrl.u32 %v597_v28, 7 }
  0xfe   : > { %vm600_vm2 = vcmp.lt.s32.totalorder %v598_v30, %v599_v29 }
  0xff   : > { %v601_v32 = vsel %vm600_vm2, %v579_v25, 0.0 }
 0x100   : > { %v603_v33 = vadd.f32 %v602_v31, %v601_v32 }
 0x102   : > { %604 = vst [vmem:[%s1783_s16] sm:$0xff] %v603_v33 }
 0x103 PF: > { %608 = sbr.rel (%p572_p0) target bundleno = 300 (0x12c), region = 84  ;;  %s968_s19 = sadd.s32 (!%p572_p0), 4294967294, %s1453_s28 }
 0x104   : > { %s613_s6 = sadd.s32 (!%p572_p0), %s1457_s29, %s968_s19 }
 0x105   : > { %s988_s24 = sshll.u32 (!%p572_p0), %s613_s6, 3 }
 0x106   : > { %s989_s14 = sadd.s32 (!%p572_p0), 8, %s988_s24 }
 0x107   : > { %p970_p4 = scmp.gt.s32.totalorder (!%p572_p0), %s989_s14, 8 }
 0x108   : > { %v609_v34 = vld [vmem:[%s435_s17] sm:$0xff] }
 0x109   : > { %1149 = vlog2.f32 %v609_v34 }
 0x113   : > { %620 = sbr.rel (%p970_p4) target bundleno = 284 (0x11c), region = 88 }
 0x116   : > { %v1150_v35 = vpop.eup %1149 }
 0x117   : > { %v611_v36 = vmul.f32 0.6931472, %v1150_v35 }
 0x118   : > { %v621_v37 = vld [vmem:[%s1785_s11] sm:$0xff] }
 0x119   : > { %v622_v38 = vadd.f32 %v621_v37, %v611_v36 }
 0x11b   : > { %623 = vst [vmem:[%s1785_s11] sm:$0xff] %v622_v38 }
 0x11c PF: > { %p971_p11 = scmp.le.s32.totalorder %s989_s14, 8 }
 0x11d   : > { %s628_s10 = ssub.s32 (!%p971_p11), 8, %s988_s24 }
 0x11e   : > { %626 = sbr.rel (%p971_p11) target bundleno = 300 (0x12c), region = 92 }
 0x123   : > { %v629_v39 = vlaneseq  ;;  %v631_v40 = vstv %s628_s10  ;;  %v634_v42 = vld [vmem:[%s1785_s11] sm:$0xff] }
 0x125   : > { %v630_v41 = vshrl.u32 %v629_v39, 7 }
 0x127   : > { %vm632_vm3 = vcmp.lt.s32.totalorder %v630_v41, %v631_v40 }
 0x128   : > { %v633_v43 = vsel %vm632_vm3, %v611_v36, 0.0 }
 0x129   : > { %v635_v44 = vadd.f32 %v634_v42, %v633_v43 }
 0x12b   : > { %636 = vst [vmem:[%s1785_s11] sm:$0xff] %v635_v44 }
 0x12c PF: > { %s978_s28 = sshll.u32 %s1457_s29, 7  ;;  %s677_s1 = sshll.u32 %s1783_s16, 4  ;;  %s678_s1 = int_to_ptr.vmem [resolvable:$true] %s677_s1 }
 0x12d   : > { %s675_s4 = scalar_lea.hbm %s1956_s5, %s978_s28  ;;  %s1845_s9 = scalar_lea.sflag [#allocation12], %s413_s12 }
 0x12e   : > { %s1263_s18 = scalar_lea.vmem %s678_s1, 128  ;;  %p1999_p10 = scmp.ne.s32.totalorder %s1991_s20, 0 }
 0x12f   : > { %p1264_p12 = scmp.ne.s32.totalorder %s678_s1, %s1263_s18  ;;  %s1478_s19 = smov [#allocation11]  }
 0x130   : > { %s1267_s6 = sshll.u32 %s1478_s19, 4  ;;  %s1268_s6 = int_to_ptr.vmem [resolvable:$false] %s1267_s6 }
 0x131   : > { %p1265_p8 = pnand %p1264_p12, %p1999_p10  ;;  %s1269_s24 = scalar_lea.vmem %s1268_s6, 256 }
 0x132   : > { %p1270_p3 = scmp.lt.s32.totalorder %s678_s1, %s1268_s6  ;;  %p1271_p7 = scmp.lt.s32.totalorder %s1269_s24, %s1263_s18 }
 0x133   : > { %p1266_p5 = pneg %p1265_p8 }
 0x134   : > { %p1272_p13 = por %p1271_p7, %p1270_p3 }
 0x136   : > { %p1273_p6 = pnand %p1272_p13, %p1266_p5 }
 0x138   : > { %1276 = shalt.err (!%p1273_p6)
}
 0x139   : > { %s1277_s14 = scalar_lea.hbm %s675_s4, 128  ;;  %s1281_s16 = scalar_lea.hbm %s1956_s5, 256 }
 0x13a   : > { %p1278_p0 = scmp.ne.s32.totalorder %s675_s4, %s1277_s14  ;;  %p1282_p2 = scmp.lt.s32.totalorder %s675_s4, %s1956_s5 }
 0x13b   : > { %p1283_p4 = scmp.lt.s32.totalorder %s1281_s16, %s1277_s14 }
 0x13c   : > { %p1279_p1 = pnand %p1278_p0, %p1999_p10 }
 0x13d   : > { %p1284_p11 = por %p1283_p4, %p1282_p2 }
 0x13e   : > { %p1280_p9 = pneg %p1279_p1 }
 0x140   : > { %p1285_p12 = pnand %p1284_p11, %p1280_p9 }
 0x142   : > { %1288 = shalt.err (!%p1285_p12)
}
 0x143   : > { %1000 = dma.vmem_to_hbm [thread:$0]  (%p1999_p10), %s678_s1, 128, %s675_s4, %s1845_s9  }
 0x144   : > { %s990_s7 = sshll.u32 %s1457_s29, 8  ;;  %s661_s18 = sshll.u32 %s1781_s0, 4  ;;  %s1867_s18 = int_to_ptr.vmem [resolvable:$true] %s661_s18 }
 0x145   : > { %s2000_s24 = sld [smem:[#allocation27_spill]]  ;;  %s638_s14 = scalar_lea.sflag [#allocation4], %s1777_s13 }
 0x146   : > { %s1289_s16 = scalar_lea.vmem %s1867_s18, 256  ;;  %s1479_s10 = smov [#allocation10]  }
 0x147   : > { %p1290_p8 = scmp.ne.s32.totalorder %s1867_s18, %s1289_s16  ;;  %s1293_s4 = sshll.u32 %s1479_s10, 4  ;;  %s1294_s4 = int_to_ptr.vmem [resolvable:$false] %s1293_s4 }
 0x148   : > { %s1295_s0 = scalar_lea.vmem %s1294_s4, 512  ;;  %p1296_p7 = scmp.lt.s32.totalorder %s1867_s18, %s1294_s4 }
 0x149   : > { %p1291_p5 = pnand %p1290_p8, %p1999_p10  ;;  %p1297_p13 = scmp.lt.s32.totalorder %s1295_s0, %s1289_s16 }
 0x14b   : > { %s2001_s12 = smov %s2000_s24  ;;  %s1865_s30 = scalar_lea.hbm %s2000_s24, %s990_s7 }
 0x14c   : > { %p1292_p3 = pneg %p1291_p5  ;;  %p1298_p6 = por %p1297_p13, %p1296_p7 }
 0x14e   : > { %p1299_p0 = pnand %p1298_p6, %p1292_p3 }
 0x150   : > { %1302 = shalt.err (!%p1299_p0)
}
 0x151   : > { %s1303_s1 = scalar_lea.hbm %s1865_s30, 256  ;;  %s1307_s19 = scalar_lea.hbm %s2001_s12, 512 }
 0x152   : > { %p1304_p1 = scmp.ne.s32.totalorder %s1865_s30, %s1303_s1  ;;  %p1308_p4 = scmp.lt.s32.totalorder %s1865_s30, %s2001_s12 }
 0x153   : > { %p1309_p11 = scmp.lt.s32.totalorder %s1307_s19, %s1303_s1 }
 0x154   : > { %p1305_p9 = pnand %p1304_p1, %p1999_p10 }
 0x155   : > { %p1310_p12 = por %p1309_p11, %p1308_p4 }
 0x156   : > { %p1306_p2 = pneg %p1305_p9 }
 0x158   : > { %p1311_p8 = pnand %p1310_p12, %p1306_p2 }
 0x15a   : > { %1314 = shalt.err (!%p1311_p8)
}
 0x15b   : > { %s1480_s16 = smov 128   ;;  %s1481_s10 = smov 8  }
 0x15c   : > { %999 = dma.vmem_to_hbm [thread:$0]  (%p1999_p10), %s1867_s18, 256, %s1865_s30, %s638_s14, %s1480_s16, %s1480_s16, %s1481_s10  }
 0x15d   : > { %s2002_s17 = sld [smem:[#allocation28_spill]]  ;;  %s690_s7 = sshll.u32 %s1785_s11, 4  ;;  %s691_s7 = int_to_ptr.vmem [resolvable:$true] %s690_s7 }
 0x15e   : > { %s1315_s19 = scalar_lea.vmem %s691_s7, 128  ;;  %s1482_s6 = smov [#allocation13]  }
 0x15f   : > { %p1316_p5 = scmp.ne.s32.totalorder %s691_s7, %s1315_s19  ;;  %s1319_s24 = sshll.u32 %s1482_s6, 4  ;;  %s1320_s24 = int_to_ptr.vmem [resolvable:$false] %s1319_s24 }
 0x160   : > { %s1321_s2 = scalar_lea.vmem %s1320_s24, 256  ;;  %p1322_p13 = scmp.lt.s32.totalorder %s691_s7, %s1320_s24 }
 0x161   : > { %p1317_p3 = pnand %p1316_p5, %p1999_p10  ;;  %p1323_p6 = scmp.lt.s32.totalorder %s1321_s2, %s1315_s19 }
 0x163   : > { %s688_s1 = scalar_lea.hbm %s2002_s17, %s978_s28  ;;  %p1318_p7 = pneg %p1317_p3 }
 0x164   : > { %p1324_p0 = por %p1323_p6, %p1322_p13 }
 0x166   : > { %p1325_p1 = pnand %p1324_p0, %p1318_p7 }
 0x168   : > { %1328 = shalt.err (!%p1325_p1)
}
 0x169   : > { %s1329_s29 = scalar_lea.hbm %s688_s1, 128  ;;  %s1333_s28 = scalar_lea.hbm %s2002_s17, 256 }
 0x16a   : > { %p1330_p9 = scmp.ne.s32.totalorder %s688_s1, %s1329_s29  ;;  %p1334_p11 = scmp.lt.s32.totalorder %s688_s1, %s2002_s17 }
 0x16b   : > { %p1335_p12 = scmp.lt.s32.totalorder %s1333_s28, %s1329_s29 }
 0x16c   : > { %p1331_p2 = pnand %p1330_p9, %p1999_p10 }
 0x16d   : > { %p1336_p8 = por %p1335_p12, %p1334_p11 }
 0x16e   : > { %p1332_p4 = pneg %p1331_p2 }
 0x170   : > { %p1337_p5 = pnand %p1336_p8, %p1332_p4 }
 0x172   : > { %1340 = shalt.err (!%p1337_p5)
}
 0x173   : > { %1001 = dma.vmem_to_hbm [thread:$0]  (%p1999_p10), %s691_s7, 128, %s688_s1, %s1845_s9  }
 0x174 PF: > { %p1029_p3 = scmp.ge.s32.totalorder %s1469_s8, 2  ;;  %s702_s2 = sand.u32 1, %s1425_s21  }
 0x175   : > { %p2003_p7 = scmp.ne.s32.totalorder %s1992_s15, 0  ;;  %s703_s14 = scalar_lea.sflag [#allocation4], %s702_s2 }
 0x177   : > { %p1019_p13 = pnand %p1029_p3, %p2003_p7 }
 0x179   : > { %p1020_p6 = pneg %p1019_p13 }
 0x17b   : > { %1414 = dma.done.wait (%p1020_p6), %s703_s14, 256  }
 0x17c   : > { %1416 = vsyncadd (%p1020_p6), %s703_s14, 4294967040  ;;  %s2004_s16 = sadd.s32 4294967294, %s1469_s8  }
 0x17d   : > { %s711_s10 = sand.u32 1, %s2004_s16  }
 0x17e   : > { %s712_s4 = scalar_lea.sflag [#allocation12], %s711_s10 }
 0x17f   : > { %1418 = dma.done.wait (%p1020_p6), %s712_s4, 256  }
 0x180   : > { %1420 = vsyncadd (%p1020_p6), %s712_s4, 4294967040  ;;  %s32_s8 = sadd.s32 1, %s1469_s8   ;;  %s2005_s28 = sld [smem:[#allocation20_spill]] }
 0x181   : > { %p29_p10 = scmp.ge.s32.totalorder %s32_s8, 8   ;;  %s2006_s29 = sld [smem:[#allocation21_spill]] }
 0x182   : > { %s2007_s30 = sld [smem:[#allocation22_spill]]  ;;  %s2009_s21 = smov %s1429_s22 }
 0x183   : > { %s2008_s7 = sld [smem:[#allocation23_spill]]  ;;  %s2010_s22 = smov %s1433_s23 }
 0x184   : > { %s2011_s23 = smov %s1683_s26  ;;  %s2012_s24 = smov %s1441_s25 }
 0x185   : > { %s1930_s25 = smov 0   ;;  %s2013_s26 = smov %s1449_s27 }
 0x186   : > { %s1935_s27 = smov 0   ;;  %31 = sbr.rel (!%p29_p10) target bundleno = 21 (0x15), region = 190 }
 0x18b   :  { %726 = vsyncpa [#allocation3], 1 }
 0x18c   :  { %728 = vsyncpa [#allocation3 + $0x1], 1 }
 0x18d   :  { %729 = vsyncpa [#allocation6], 1 }
 0x18e   :  { %731 = vsyncpa [#allocation6 + $0x1], 1 }
 0x18f   :  { %732 = vsyncpa [#allocation9], 1 }
 0x190   :  { %734 = vsyncpa [#allocation9 + $0x1], 1 }
 0x191   :  { %735 = vsyncpa [#allocation4], 1 }
 0x192   :  { %737 = vsyncpa [#allocation4 + $0x1], 1 }
 0x193   :  { %738 = vsyncpa [#allocation12], 1 }
 0x194   :  { %740 = vsyncpa [#allocation12 + $0x1], 1 }

</bundles_post_ra>
